<compile_context>
chip_gen: v7x
topology: tpu7x:2x2x1
jax: 0.10.0
libtpu: 0.0.40
codegen_flags: <defaults>
</compile_context>

<pallas_src>
import math

import jax
import jax.numpy as jnp
from jax.experimental import pallas as pl
from jax.experimental.pallas import tpu as pltpu


def _sublane_pack(dtype) -> int:
    """Rows per packed 32-bit sublane tile for this dtype (8/16/32)."""
    itemsize = jnp.dtype(dtype).itemsize
    return {4: 8, 2: 16, 1: 32}.get(itemsize, 8)


def _make_dma_copy_kernel(row_starts, row_sizes, total_rows):
    """Build a kernel that DMA-copies an HBM (rows, cols) array to the output."""
    single_full = (
        len(row_starts) == 1 and row_starts[0] == 0 and row_sizes[0] == total_rows
    )

    def kernel(x_hbm, o_hbm, sem):
        copies = []
        if single_full:
            cp = pltpu.make_async_copy(x_hbm, o_hbm, sem.at[0])
            cp.start()
            copies.append(cp)
        else:
            for i, (r0, nr) in enumerate(zip(row_starts, row_sizes)):
                cp = pltpu.make_async_copy(
                    x_hbm.at[pl.ds(r0, nr), :],
                    o_hbm.at[pl.ds(r0, nr), :],
                    sem.at[i],
                )
                cp.start()
                copies.append(cp)
        for cp in copies:
            cp.wait()

    return kernel


def flatten(x: jax.Array) -> jax.Array:
    """Pallas equivalent of torch Flatten: (B, ...) -> (B, prod(...))."""
    b = x.shape[0]
    flat = int(math.prod(x.shape[1:])) if x.ndim > 1 else 1

    # The flatten itself (torch .view semantics). XLA handles the tiled-layout
    # change here exactly once; the kernel below only moves bytes.
    x2 = x.reshape(b, flat)

    if b == 0 or flat == 0:
        return x2  # degenerate: nothing to copy

    itemsize = jnp.dtype(x.dtype).itemsize
    total_bytes = b * flat * itemsize
    pack = _sublane_pack(x.dtype)

    # Split the copy into a few row-aligned DMAs only when it is large enough
    # for multiple in-flight DMAs to matter; otherwise issue one DMA.
    n_chunks = 4 if (total_bytes >= (16 << 20) and b >= 4 * pack) else 1
    rows_per_chunk = math.ceil(math.ceil(b / n_chunks) / pack) * pack
    row_starts = tuple(range(0, b, rows_per_chunk))
    row_sizes = tuple(min(rows_per_chunk, b - s) for s in row_starts)
    n_sems = len(row_starts)

    kernel = _make_dma_copy_kernel(row_starts, row_sizes, b)

    out = pl.pallas_call(
        kernel,
        out_shape=jax.ShapeDtypeStruct((b, flat), x.dtype),
        in_specs=[pl.BlockSpec(memory_space=pl.ANY)],
        out_specs=pl.BlockSpec(memory_space=pl.ANY),
        scratch_shapes=[pltpu.SemaphoreType.DMA((n_sems,))],
        cost_estimate=pl.CostEstimate(
            flops=0, transcendentals=0, bytes_accessed=2 * total_bytes
        ),
    )(x2)
    return out


if __name__ == "__main__":
    key = jax.random.PRNGKey(0)
    # NCHW activation shape consistent with the prototypical-networks conv net.
    x = jax.random.normal(key, (2, 4, 16, 16), dtype=jnp.float32)

    y = flatten(x)
    jax.block_until_ready(y)

    # Correctness check against plain JAX reshape (== torch .view semantics).
    ref = x.reshape(x.shape[0], -1)
    assert y.shape == (2, 4 * 16 * 16), y.shape
    assert y.dtype == x.dtype
    assert bool(jnp.array_equal(y, ref))

    print("KERNEL_OK")
</pallas_src>

<mosaic_0001>
module attributes {stable_mosaic.version = 11 : i64} {
  func.func @kernel(%arg0: memref<2x1024xf32, #tpu.memory_space<any>>, %arg1: memref<2x1024xf32, #tpu.memory_space<any>>, %arg2: memref<1x!tpu.dma_semaphore, #tpu.memory_space<semaphore_mem>>) attributes {dimension_semantics = [], scalar_prefetch = 0 : i64, scratch_operands = 1 : i64, tpu.core_type = #tpu.core_type<tc>} {
    %c0_i32 = arith.constant 0 : i32
    %0 = tpu.memref_slice %arg2[%c0_i32] : memref<1x!tpu.dma_semaphore, #tpu.memory_space<semaphore_mem>> -> memref<1x!tpu.dma_semaphore, #tpu.memory_space<semaphore_mem>>
    %1 = tpu.memref_squeeze %0 : memref<1x!tpu.dma_semaphore, #tpu.memory_space<semaphore_mem>> -> memref<!tpu.dma_semaphore, #tpu.memory_space<semaphore_mem>>
    tpu.enqueue_dma source(%arg0 : memref<2x1024xf32, #tpu.memory_space<any>>) target(%arg1 : memref<2x1024xf32, #tpu.memory_space<any>>) target_semaphore(%1 : memref<!tpu.dma_semaphore, #tpu.memory_space<semaphore_mem>>)
    %c0_i32_0 = arith.constant 0 : i32
    %2 = tpu.memref_slice %arg2[%c0_i32_0] : memref<1x!tpu.dma_semaphore, #tpu.memory_space<semaphore_mem>> -> memref<1x!tpu.dma_semaphore, #tpu.memory_space<semaphore_mem>>
    %3 = tpu.memref_squeeze %2 : memref<1x!tpu.dma_semaphore, #tpu.memory_space<semaphore_mem>> -> memref<!tpu.dma_semaphore, #tpu.memory_space<semaphore_mem>>
    tpu.wait_dma2 semaphore(%3 : memref<!tpu.dma_semaphore, #tpu.memory_space<semaphore_mem>>) src(%arg0 : memref<2x1024xf32, #tpu.memory_space<any>>) dst(%arg1 : memref<2x1024xf32, #tpu.memory_space<any>>)
    return
  }
}

</mosaic_0001>

<bundles_post_ra>
// kernel: tpu_custom_call.1
= control target key start
LH: loop header
LB: loop body
LE: loop exit
PB: predicated region body
PF: predicated region fallthrough
CT: control target
= control target key end

     0   :  { %s35_s6 = smov [#allocation2]   ;;  %s36_s7 = smov [#allocation3]   ;;  %s54_s0 = inlined_call_operand.hbm [shape: f32[2,1024], index: 0, kind: input, shape index: {}]   ;;  %s55_s1 = inlined_call_operand.hbm [shape: f32[2,1024], index: 1, kind: output, shape index: {}]  }
   0x1   :  { %s37_s8 = smov 0  }
   0x2   :  { %18 = dma.general %s54_s0, 256, %s55_s1, %s35_s6, %s36_s7, [#allocation4], %s37_s8, 0  }
   0x3   :  { %33 = dma.done.wait [#allocation2], 256 }
   0x4   :  { %34 = vsyncadd [#allocation2], 4294967040 }
   0x5   :  { %23 = vsyncmov [#allocation2] }
   0x8   :  { %s24_s13 = vpop.sfrf %23 }
   0x9   :  { %p29_p0 = scmp.ne.s32.totalorder %s24_s13, 0 }
   0xb   :  { %28 = shalt.err (%p29_p0)  }

</bundles_post_ra>
